<compile_context>
chip_gen: v7x
topology: tpu7x:2x2x1
jax: 0.10.0
libtpu: 0.0.40
codegen_flags: <defaults>
</compile_context>

<pallas_src>
import functools

import jax
import jax.numpy as jnp
from jax.experimental import pallas as pl
from jax.experimental.pallas import tpu as pltpu


def _round_up(x: int, m: int) -> int:
    return (x + m - 1) // m * m


def _vmem_budget_bytes() -> int:
    """Generation-aware scoped-VMEM target for this kernel."""
    try:
        cap = int(pltpu.get_tpu_info().vmem_capacity_bytes)
    except Exception:  # no TPU info available -> assume the smallest (v7x-like) VMEM
        cap = 64 * 1024 * 1024
    if cap <= 64 * 1024 * 1024:
        # v7x: 64 MiB/TC physical -> leave headroom for compiler scratch.
        return 48 * 1024 * 1024
    # v5e / v6e: 128 MiB physical -> 64 MiB scoped is plenty and beats the 16/32 MiB
    # defaults without starving anything else.
    return 64 * 1024 * 1024


def _pick_tile_n(n_rows: int, n_cols: int, itemsize: int, vmem_budget: int) -> int:
    sub = 16 if itemsize < 4 else 8          # bf16 packs 16 rows per sublane tile
    # Per-row VMEM model: 2 inputs x 2 pipeline buffers in the native dtype plus
    # ~5 full-tile f32 temporaries for the upcast softmax math.
    bytes_per_row = n_cols * (4 * itemsize + 5 * 4)
    tile = max(sub, vmem_budget // max(1, bytes_per_row))
    # Byte budget governs; the row cap only stops pathological tiny-C cases.
    tile = min(tile, 8192)
    # Keep >= ~4 grid steps so double-buffering (and the v7x 2-TC split) still engage.
    tile = min(tile, _round_up(-(-n_rows // 4), sub))
    tile = min(tile, _round_up(n_rows, sub))
    return max(sub, (tile // sub) * sub)


def _distill_kernel(logits_ref, soft_ref, out_ref, *, inv_temp, n_valid, tile_n):
    i = pl.program_id(0)

    # Stream in native dtype (possibly bf16), compute in f32. Divide-by-temp is a
    # hoisted multiply.
    x = logits_ref[...].astype(jnp.float32) * inv_temp      # student logits / T
    y = soft_ref[...].astype(jnp.float32) * inv_temp        # teacher logits / T

    # Student log-softmax pieces (class axis = last axis = lanes).
    x_max = jnp.max(x, axis=1, keepdims=True)
    x_sh = x - x_max
    lse_x = jnp.log(jnp.sum(jnp.exp(x_sh), axis=1, keepdims=True))

    # Teacher softmax pieces.
    y_max = jnp.max(y, axis=1, keepdims=True)
    y_sh = y - y_max
    ey = jnp.exp(y_sh)
    sy = jnp.sum(ey, axis=1, keepdims=True)
    log_sy = jnp.log(sy)

    # Fused per-row KL:
    #   sum_c p*(log p - log q) = (1/sy) * sum_c ey*(y_sh - x_sh) + (lse_x - log_sy)
    a = jnp.sum(ey * (y_sh - x_sh), axis=1, keepdims=True)
    # Reciprocal is per-row ((tile_n, 1) elements, ~1/C of the work) so exact rcp is
    # free and keeps tight (1e-4) parity with the reference.
    row_kl = a * pl.reciprocal(sy, approx=False) + (lse_x - log_sy)   # (tile_n, 1)

    # Mask padded rows of the final partial tile (statically elided when N % tile == 0).
    # Select-based masking AFTER the per-row math, so garbage rows never poison sums.
    if n_valid % tile_n != 0:
        row_ids = i * tile_n + jax.lax.broadcasted_iota(jnp.int32, (tile_n, 1), 0)
        row_kl = jnp.where(row_ids < n_valid, row_kl, 0.0)

    # Per-tile partial sum, written as one lane-dense unmasked vreg store.
    partial = jnp.sum(row_kl)
    out_ref[...] = jnp.full((1, 8, 128), partial, dtype=jnp.float32)


def distill_loss(logits: jax.Array, soft_labels: jax.Array,
                 temp: float = 30.0, tile_n=None) -> jax.Array:
    """Pallas TPU implementation of DistillLoss.forward. Returns a scalar."""
    assert logits.shape == soft_labels.shape and logits.ndim == 2
    n, c = logits.shape
    itemsize = logits.dtype.itemsize
    sub = 16 if itemsize < 4 else 8
    vmem_budget = _vmem_budget_bytes()
    if tile_n is None:
        tile_n = _pick_tile_n(n, c, itemsize, vmem_budget)
    tile_n = max(sub, _round_up(int(tile_n), sub))
    num_tiles = pl.cdiv(n, tile_n)

    kernel = functools.partial(
        _distill_kernel, inv_temp=1.0 / float(temp), n_valid=n, tile_n=tile_n)

    cost = pl.CostEstimate(
        flops=8 * n * c,
        transcendentals=2 * n * c,
        bytes_accessed=2 * n * c * itemsize + num_tiles * 8 * 128 * 4,
    )

    partials = pl.pallas_call(
        kernel,
        out_shape=jax.ShapeDtypeStruct((num_tiles, 8, 128), jnp.float32),
        grid=(num_tiles,),
        in_specs=[
            pl.BlockSpec((tile_n, c), lambda i: (i, 0)),
            pl.BlockSpec((tile_n, c), lambda i: (i, 0)),
        ],
        out_specs=pl.BlockSpec((1, 8, 128), lambda i: (i, 0, 0)),
        compiler_params=pltpu.CompilerParams(
            dimension_semantics=("parallel",),
            vmem_limit_bytes=vmem_budget,
        ),
        cost_estimate=cost,
    )(logits, soft_labels)

    # batchmean over the true N; t^2 applied once here (not per tile).
    return (float(temp) ** 2) * jnp.sum(partials[:, 0, 0]) / n


def _reference(logits, soft_labels, temp):
    # Pure-JAX reference for sanity checking.
    t = float(temp)
    log_q = jax.nn.log_softmax(logits.astype(jnp.float32) / t, axis=1)
    p = jax.nn.softmax(soft_labels.astype(jnp.float32) / t, axis=1)
    log_p = jax.nn.log_softmax(soft_labels.astype(jnp.float32) / t, axis=1)
    kl = jnp.sum(p * (log_p - log_q)) / logits.shape[0]
    return t * t * kl


if __name__ == "__main__":
    key = jax.random.PRNGKey(0)
    k1, k2 = jax.random.split(key)

    # Case 1: batch not a multiple of the row tile -> multi-step grid plus the
    # padded-row masking path (explicit small tile to force several grid steps).
    N, C = 20, 128
    logits = jax.random.normal(k1, (N, C), dtype=jnp.float32) * 3.0
    soft_labels = jax.random.normal(k2, (N, C), dtype=jnp.float32) * 3.0
    out = jax.block_until_ready(distill_loss(logits, soft_labels, temp=30.0, tile_n=8))
    ref = _reference(logits, soft_labels, temp=30.0)
    assert jnp.allclose(out, ref, rtol=1e-4, atol=1e-5), (out, ref)

    # Case 2: class count not a multiple of 128 (lane padding) + auto tile pick.
    k3, k4 = jax.random.split(k1)
    N2, C2 = 16, 96
    logits2 = jax.random.normal(k3, (N2, C2), dtype=jnp.float32) * 2.0
    soft_labels2 = jax.random.normal(k4, (N2, C2), dtype=jnp.float32) * 2.0
    out2 = jax.block_until_ready(distill_loss(logits2, soft_labels2, temp=30.0))
    ref2 = _reference(logits2, soft_labels2, temp=30.0)
    assert jnp.allclose(out2, ref2, rtol=1e-4, atol=1e-5), (out2, ref2)

    print("KERNEL_OK")
</pallas_src>

<mosaic_0001>
module attributes {stable_mosaic.version = 11 : i64} {
  func.func @_distill_kernel(%arg0: i32, %arg1: memref<8x128xf32, #tpu.memory_space<vmem>>, %arg2: memref<8x128xf32, #tpu.memory_space<vmem>>, %arg3: memref<1x8x128xf32, #tpu.memory_space<vmem>>) attributes {dimension_semantics = [#tpu.dimension_semantics<parallel>], iteration_bounds = array<i64: 3>, scalar_prefetch = 0 : i64, scratch_operands = 0 : i64, tpu.core_type = #tpu.core_type<tc>, window_params = [{transform_indices = @transform_0, window_bounds = array<i64: 8, 128>}, {transform_indices = @transform_1, window_bounds = array<i64: 8, 128>}, {transform_indices = @transform_2, window_bounds = array<i64: 1, 8, 128>}]} {
    %c0 = arith.constant 0 : index
    %c0_0 = arith.constant 0 : index
    %0 = vector.load %arg1[%c0, %c0_0] : memref<8x128xf32, #tpu.memory_space<vmem>>, vector<8x128xf32>
    %cst = arith.constant 0.0333333351 : f32
    %1 = vector.broadcast %cst : f32 to vector<8x128xf32>
    %2 = arith.mulf %0, %1 : vector<8x128xf32>
    %c0_1 = arith.constant 0 : index
    %c0_2 = arith.constant 0 : index
    %3 = vector.load %arg2[%c0_1, %c0_2] : memref<8x128xf32, #tpu.memory_space<vmem>>, vector<8x128xf32>
    %cst_3 = arith.constant 0.0333333351 : f32
    %4 = vector.broadcast %cst_3 : f32 to vector<8x128xf32>
    %5 = arith.mulf %3, %4 : vector<8x128xf32>
    %cst_4 = arith.constant dense<0xFF800000> : vector<8xf32>
    %6 = vector.multi_reduction <maximumf>, %2, %cst_4 [1] : vector<8x128xf32> to vector<8xf32>
    %7 = vector.shape_cast %6 : vector<8xf32> to vector<8x1xf32>
    %8 = vector.broadcast %7 : vector<8x1xf32> to vector<8x128xf32>
    %9 = arith.subf %2, %8 : vector<8x128xf32>
    %10 = math.exp %9 : vector<8x128xf32>
    %cst_5 = arith.constant dense<0.000000e+00> : vector<8xf32>
    %11 = vector.multi_reduction <add>, %10, %cst_5 [1] : vector<8x128xf32> to vector<8xf32>
    %12 = vector.shape_cast %11 : vector<8xf32> to vector<8x1xf32>
    %13 = math.log %12 : vector<8x1xf32>
    %cst_6 = arith.constant dense<0xFF800000> : vector<8xf32>
    %14 = vector.multi_reduction <maximumf>, %5, %cst_6 [1] : vector<8x128xf32> to vector<8xf32>
    %15 = vector.shape_cast %14 : vector<8xf32> to vector<8x1xf32>
    %16 = vector.broadcast %15 : vector<8x1xf32> to vector<8x128xf32>
    %17 = arith.subf %5, %16 : vector<8x128xf32>
    %18 = math.exp %17 : vector<8x128xf32>
    %cst_7 = arith.constant dense<0.000000e+00> : vector<8xf32>
    %19 = vector.multi_reduction <add>, %18, %cst_7 [1] : vector<8x128xf32> to vector<8xf32>
    %20 = vector.shape_cast %19 : vector<8xf32> to vector<8x1xf32>
    %21 = math.log %20 : vector<8x1xf32>
    %22 = arith.subf %17, %9 : vector<8x128xf32>
    %23 = arith.mulf %18, %22 : vector<8x128xf32>
    %cst_8 = arith.constant dense<0.000000e+00> : vector<8xf32>
    %24 = vector.multi_reduction <add>, %23, %cst_8 [1] : vector<8x128xf32> to vector<8xf32>
    %25 = vector.shape_cast %24 : vector<8xf32> to vector<8x1xf32>
    %26 = tpu.reciprocal %20 : vector<8x1xf32> -> vector<8x1xf32>
    %27 = arith.mulf %25, %26 : vector<8x1xf32>
    %28 = arith.subf %13, %21 : vector<8x1xf32>
    %29 = arith.addf %27, %28 : vector<8x1xf32>
    %c8_i32 = arith.constant 8 : i32
    %30 = arith.muli %arg0, %c8_i32 : i32
    %31 = tpu.iota {dimensions = array<i32: 0>} : vector<8x1xi32>
    %32 = vector.broadcast %30 : i32 to vector<8x1xi32>
    %33 = arith.addi %32, %31 : vector<8x1xi32>
    %c20_i32 = arith.constant 20 : i32
    %34 = vector.broadcast %c20_i32 : i32 to vector<8x1xi32>
    %35 = arith.cmpi slt, %33, %34 : vector<8x1xi32>
    %cst_9 = arith.constant 0.000000e+00 : f32
    %36 = vector.broadcast %cst_9 : f32 to vector<8x1xf32>
    %37 = arith.select %35, %29, %36 : vector<8x1xi1>, vector<8x1xf32>
    %38 = vector.shape_cast %37 : vector<8x1xf32> to vector<1x8x1xf32>
    %cst_10 = arith.constant dense<0.000000e+00> : vector<1xf32>
    %39 = vector.multi_reduction <add>, %38, %cst_10 [1, 2] : vector<1x8x1xf32> to vector<1xf32>
    %40 = vector.shape_cast %39 : vector<1xf32> to vector<1x1x1xf32>
    %41 = vector.extract %40[0, 0, 0] : f32 from vector<1x1x1xf32>
    %42 = vector.broadcast %41 : f32 to vector<1x8x128xf32>
    %c0_11 = arith.constant 0 : index
    %c0_12 = arith.constant 0 : index
    %c0_13 = arith.constant 0 : index
    %43 = vector.load %arg3[%c0_11, %c0_12, %c0_13] : memref<1x8x128xf32, #tpu.memory_space<vmem>>, vector<1x8x128xf32>
    tpu.vector_store %arg3[%c0_11, %c0_12, %c0_13], %42 {strides = array<i32>} : memref<1x8x128xf32, #tpu.memory_space<vmem>>, vector<1x8x128xf32>,
    return
  }
  func.func @transform_0(%arg0: i32) -> (i32, i32) {
    %c0_i32 = arith.constant 0 : i32
    %c0_i32_0 = arith.constant 0 : i32
    return %arg0, %c0_i32 : i32, i32
  }
  func.func @transform_1(%arg0: i32) -> (i32, i32) {
    %c0_i32 = arith.constant 0 : i32
    %c0_i32_0 = arith.constant 0 : i32
    return %arg0, %c0_i32 : i32, i32
  }
  func.func @transform_2(%arg0: i32) -> (i32, i32, i32) {
    %c0_i32 = arith.constant 0 : i32
    %c0_i32_0 = arith.constant 0 : i32
    %c0_i32_1 = arith.constant 0 : i32
    return %arg0, %c0_i32, %c0_i32_0 : i32, i32, i32
  }
}

</mosaic_0001>

<bundles_post_ra>
// kernel: tpu_custom_call.1
= control target key start
LH: loop header
LB: loop body
LE: loop exit
PB: predicated region body
PF: predicated region fallthrough
CT: control target
= control target key end

     0   :  { %7 = vsyncpa [#allocation3], 0  ;;  %s795_s0 = inlined_call_operand.hbm [shape: f32[20,128], index: 0, kind: input, shape index: {}]   ;;  %s796_s1 = inlined_call_operand.hbm [shape: f32[20,128], index: 1, kind: input, shape index: {}]   ;;  %s797_s2 = inlined_call_operand.hbm [shape: f32[3,8,128], index: 2, kind: output, shape index: {}]  }
   0x1   :  { %9 = vsyncpa [#allocation3 + $0x1], 0 }
   0x2   :  { %10 = vsyncpa [#allocation6], 0 }
   0x3   :  { %12 = vsyncpa [#allocation6 + $0x1], 0 }
   0x4   :  { %13 = vsyncpa [#allocation4], 0 }
   0x5   :  { %15 = vsyncpa [#allocation4 + $0x1], 0  ;;  %s582_s9 = smov 0   ;;  %s584_s10 = smov 0  }
   0x6   :  { %s586_s11 = smov 0   ;;  %s588_s12 = smov 0  }
   0x7 LB: > { %s603_s13 = sadd.s32 4294967295, %s562_s12   ;;  %s353_s14 = sadd.s32 4294967294, %s562_s12   ;;  %s562_s12 = sphi %s588_s12, %s815_s12   ;;  %s558_s11 = sphi %s586_s11, %s814_s11   ;;  %s554_s10 = sphi %s584_s10, %s813_s10   ;;  %s550_s9 = sphi %s582_s9, %s812_s9  }
   0x8   : > { %s607_s15 = sadd.s32 1, %s562_s12   ;;  %s28_s16 = sadd.s32 1, %s558_s11 }
   0x9   : > { %s25_s17 = ssub.s32 %s562_s12, %s607_s15  ;;  %p35_p0 = scmp.ne.s32.totalorder %s558_s11, %s554_s10 }
   0xa   : > { %p26_p1 = scmp.eq.s32.totalorder %s25_s17, 0  ;;  %p36_p2 = scmp.eq.s32.totalorder %s562_s12, 0 }
   0xb   : > { %p41_p3 = scmp.ne.s32.totalorder %s554_s10, %s550_s9  ;;  %p42_p4 = scmp.eq.s32.totalorder %s603_s13, 0 }
   0xc   : > { %s619_s18 = scalar_select %p26_p1, %s558_s11, %s28_s16  }
   0xd   : > { %p621_p5 = por %p36_p2, %p35_p0  ;;  %p625_p6 = por %p42_p4, %p41_p3 }
   0xe   : > { %p91_p7 = scmp.eq.s32.totalorder %s603_s13, 2  ;;  %p97_p8 = scmp.eq.s32.totalorder %s353_s14, 2 }
   0xf   : > { %s801_s20 = scalar_select %p625_p6, 1, 0 }
  0x10   : > { %p388_p9 = scmp.lt.s32.totalorder %s562_s12, 3  ;;  %p631_p10 = por %p91_p7, %p35_p0 }
  0x11   : > { %p635_p11 = por %p97_p8, %p41_p3  ;;  %s640_s23 = sand.u32 1, %s558_s11  }
  0x12   : > { %s802_s21 = scalar_select %p631_p10, 1, 0 }
  0x13   : > { %s803_s22 = scalar_select %p635_p11, 1, 0 }
  0x14   : > { %s357_s24 = sshll.u32 %s562_s12, 7  ;;  %s356_s25 = sshll.u32 %s640_s23, 3 }
  0x15   : > { %s649_s28 = scalar_lea.hbm %s795_s0, %s357_s24  ;;  %s121_s29 = scalar_lea.vmem [#allocation2], %s356_s25 }
  0x16   : > { %s128_s30 = sshll.u32 %s121_s29, 4  ;;  %p655_p12 = pnand %p388_p9, %p621_p5  ;;  %s659_s30 = int_to_ptr.vmem [resolvable:$true] %s128_s30 }
  0x17   : > { %s118_s4 = scalar_lea.sflag [#allocation3], %s640_s23  ;;  %s432_s5 = scalar_lea.hbm %s649_s28, 128 }
  0x18   : > { %p433_p1 = scmp.ne.s32.totalorder %s649_s28, %s432_s5  ;;  %p434_p2 = pneg %p655_p12 }
  0x19   : > { %s437_s8 = scalar_lea.hbm %s795_s0, 384  ;;  %p438_p5 = scmp.lt.u32.totalorder %s649_s28, %s795_s0 }
  0x1a   : > { %p435_p3 = pnand %p434_p2, %p433_p1  ;;  %p439_p7 = scmp.lt.u32.totalorder %s437_s8, %s432_s5 }
  0x1b   : > { %p441_p9 = scmp.lt.u32.totalorder %s432_s5, %s649_s28 }
  0x1c   : > { %p436_p4 = pneg %p435_p3  ;;  %p440_p8 = por %p439_p7, %p438_p5 }
  0x1e   : > { %p442_p13 = por %p441_p9, %p440_p8 }
  0x20   : > { %p443_p0 = pnand %p442_p13, %p436_p4 }
  0x22   : > { %446 = shalt.err (!%p443_p0)
}
  0x23   : > { %s447_s17 = scalar_lea.vmem %s659_s30, 128  ;;  %s564_s19 = smov [#allocation2]  }
  0x24   : > { %p448_p1 = scmp.ne.s32.totalorder %s659_s30, %s447_s17  ;;  %s452_s26 = sshll.u32 %s564_s19, 4  ;;  %s453_s26 = int_to_ptr.vmem [resolvable:$false] %s452_s26 }
  0x25   : > { %s454_s27 = scalar_lea.vmem %s453_s26, 256  ;;  %p455_p10 = scmp.lt.s32.totalorder %s659_s30, %s453_s26 }
  0x26   : > { %p450_p3 = pnand %p448_p1, %p434_p2  ;;  %p456_p5 = scmp.lt.s32.totalorder %s454_s27, %s447_s17 }
  0x28   : > { %p451_p11 = pneg %p450_p3  ;;  %p457_p7 = por %p456_p5, %p455_p10 }
  0x2a   : > { %p458_p8 = pnand %p457_p7, %p451_p11 }
  0x2c   : > { %461 = shalt.err (!%p458_p8)
}
  0x2d   : > { %380 = dma.hbm_to_vmem [thread:$0]  (!%p655_p12), %s649_s28, 128, %s659_s30, %s118_s4  }
  0x2e   : > { %p805_p13 = scmp.lt.s32.totalorder %s562_s12, 4  ;;  %p806_p0 = scmp.ge.s32.totalorder %s562_s12, 1 }
  0x2f   : > { %s702_s7 = scalar_lea.hbm %s796_s1, %s357_s24  ;;  %s139_s8 = scalar_lea.vmem [#allocation5], %s356_s25 }
  0x30   : > { %p693_p4 = pnand %p806_p0, %p805_p13  ;;  %s146_s14 = sshll.u32 %s139_s8, 4  ;;  %s147_s14 = int_to_ptr.vmem [resolvable:$true] %s146_s14 }
  0x31   : > { %s136_s28 = scalar_lea.sflag [#allocation6], %s640_s23  ;;  %s462_s30 = scalar_lea.hbm %s702_s7, 128 }
  0x32   : > { %s807_s29 = scalar_select %p693_p4, 1, 0 }
  0x33   : > { %p463_p10 = scmp.ne.s32.totalorder %s702_s7, %s462_s30  ;;  %s467_s24 = scalar_lea.hbm %s796_s1, 384 }
  0x34   : > { %p468_p1 = scmp.lt.u32.totalorder %s702_s7, %s796_s1  ;;  %p469_p3 = scmp.lt.u32.totalorder %s467_s24, %s462_s30 }
  0x35   : > { %p465_p11 = pnand %p463_p10, %p434_p2  ;;  %p471_p7 = scmp.lt.u32.totalorder %s462_s30, %s702_s7 }
  0x36   : > { %p470_p5 = por %p469_p3, %p468_p1 }
  0x37   : > { %p466_p9 = pneg %p465_p11 }
  0x38   : > { %p472_p8 = por %p471_p7, %p470_p5 }
  0x3a   : > { %p473_p13 = pnand %p472_p8, %p466_p9 }
  0x3c   : > { %476 = shalt.err (!%p473_p13)
}
  0x3d   : > { %s477_s23 = scalar_lea.vmem %s147_s14, 128  ;;  %s565_s25 = smov [#allocation5]  }
  0x3e   : > { %p478_p0 = scmp.ne.s32.totalorder %s147_s14, %s477_s23  ;;  %s482_s26 = sshll.u32 %s565_s25, 4  ;;  %s483_s26 = int_to_ptr.vmem [resolvable:$false] %s482_s26 }
  0x3f   : > { %s484_s27 = scalar_lea.vmem %s483_s26, 256  ;;  %p485_p6 = scmp.lt.s32.totalorder %s147_s14, %s483_s26 }
  0x40   : > { %p480_p10 = pnand %p478_p0, %p434_p2  ;;  %p486_p4 = scmp.lt.s32.totalorder %s484_s27, %s477_s23 }
  0x42   : > { %p481_p11 = pneg %p480_p10  ;;  %p487_p1 = por %p486_p4, %p485_p6 }
  0x44   : > { %p488_p3 = pnand %p487_p1, %p481_p11 }
  0x46   : > { %491 = shalt.err (!%p488_p3)
}
  0x47   : > { %383 = dma.hbm_to_vmem [thread:$0]  (!%p655_p12), %s702_s7, 128, %s147_s14, %s136_s28  }
  0x48   : > { %p808_p9 = scmp.ne.s32.totalorder %s807_s29, 0 }
  0x49   : > { %s729_s5 = sand.u32 (!%p808_p9), 1, %s554_s10   ;;  %p809_p6 = scmp.ne.s32.totalorder (!%p808_p9), %s801_s20, 0 }
  0x4a   : > { %155 = sbr.rel (%p808_p9) target bundleno = 628 (0x274), region = 28  ;;  %s732_s6 = sshll.u32 (!%p808_p9), %s729_s5, 3 }
  0x4b   : > { %s158_s8 = scalar_lea.sflag (!%p808_p9), [#allocation3], %s729_s5  ;;  %s161_s30 = scalar_lea.vmem (!%p808_p9), [#allocation2], %s732_s6 }
  0x51   : > { %537 = dma.done.wait (%p809_p6), %s158_s8, 128  }
  0x52   : > { %539 = vsyncadd (%p809_p6), %s158_s8, 4294967168  ;;  %s167_s3 = scalar_lea.sflag [#allocation6], %s729_s5  ;;  %s170_s29 = scalar_lea.vmem [#allocation5], %s732_s6 }
  0x53   : > { %541 = dma.done.wait (%p809_p6), %s167_s3, 128  }
  0x54   : > { %543 = vsyncadd (%p809_p6), %s167_s3, 4294967168  ;;  %v196_v0 = vld [vmem:[%s161_s30] sm:$0xff]  ;;  %v198_v1 = vld [vmem:[%s170_s29] sm:$0xff]  ;;  %v227_v16 = vlaneseq  ;;  %s364_s20 = sshll.u32 %s603_s13, 3  ;;  %vm233_vm1 = vcmask 7168   ;;  %s195_s7 = scalar_lea.vmem [#allocation7], %s732_s6 }
  0x55   : > { %v197_v2 = vmul.f32 0.033333335, %v196_v0  ;;  %v199_v3 = vmul.f32 0.033333335, %v198_v1  ;;  %v229_v18 = vstv %s364_s20  ;;  %s260_s14 = sshll.u32 %s195_s7, 4  ;;  %s366_s28 = sshll.u32 %s603_s13, 7  ;;  %s749_s14 = int_to_ptr.vmem [resolvable:$true] %s260_s14 }
  0x56   : > { %v228_v17 = vshrl.u32 %v227_v16, 7  ;;  %s754_s17 = scalar_lea.hbm %s797_s2, %s366_s28  ;;  %s247_s19 = scalar_lea.sflag [#allocation4], %s729_s5 }
  0x57   : > { %200 = vmax.xlane.f32.xlu0 %v197_v2  ;;  %s492_s23 = scalar_lea.vmem %s749_s14, 128  ;;  %p810_p2 = scmp.ne.s32.totalorder %s802_s21, 0 }
  0x58   : > { %v230_v21 = vadd.s32 %v229_v18, %v228_v17  ;;  %p493_p12 = scmp.ne.s32.totalorder %s749_s14, %s492_s23  ;;  %s566_s13 = smov [#allocation7]  }
  0x59   : > { %s496_s25 = sshll.u32 %s566_s13, 4  ;;  %s497_s25 = int_to_ptr.vmem [resolvable:$false] %s496_s25 }
  0x5a   : > { %vm231_vm0 = vcmp.lt.s32.totalorder %v230_v21, 20  ;;  %p494_p4 = pnand %p493_p12, %p810_p2  ;;  %s498_s26 = scalar_lea.vmem %s497_s25, 256 }
  0x5b   : > { %209 = vmax.xlane.f32.xlu0 %v199_v3  ;;  %p499_p7 = scmp.lt.s32.totalorder %s749_s14, %s497_s25  ;;  %p500_p8 = scmp.lt.s32.totalorder %s498_s26, %s492_s23 }
  0x5c   : > { %p495_p5 = pneg %p494_p4 }
  0x5d   : > { %p501_p13 = por %p500_p8, %p499_p7 }
  0x5f   : > { %p502_p0 = pnand %p501_p13, %p495_p5 }
  0xe4   : > { %v201_v4 = vpop.xlane.xlu0 %200 }
  0xe5   : > { %v202_v5 = vsub.f32 %v197_v2, %v201_v4 }
  0xe7   : > { %v203_v6 = vmul.f32 1.442695, %v202_v5 }
  0xe8   : > { %v210_v7 = vpop.xlane.xlu0 %209 }
  0xe9   : > { %v211_v8 = vsub.f32 %v199_v3, %v210_v7  ;;  %422 = vpow2.f32 %v203_v6 }
  0xeb   : > { %v212_v9 = vmul.f32 1.442695, %v211_v8  ;;  %v218_v11 = vsub.f32 %v211_v8, %v202_v5 }
  0xed   : > { %424 = vpow2.f32 %v212_v9 }
  0xf3   : > { %v423_v10 = vpop.eup %422 }
  0xf4   : > { %205 = vadd.xlane.f32.xlu1 %v423_v10 }
  0xf7   : > { %v425_v12 = vpop.eup %424 }
  0xf8   : > { %214 = vadd.xlane.f32.xlu1 %v425_v12  ;;  %v219_v13 = vmul.f32 %v425_v12, %v218_v11 }
  0xfa   : > { %220 = vadd.xlane.f32.xlu0 %v219_v13 }
 0x181   : > { %v206_v14 = vpop.xlane.xlu1 %205 }
 0x182   : > { %426 = vlog2.f32 %v206_v14 }
 0x185   : > { %v215_v15 = vpop.xlane.xlu1 %214 }
 0x186   : > { %428 = vlog2.f32 %v215_v15 }
 0x187   : > { %430 = vrcp.f32 %v215_v15  ;;  %v221_v25 = vpop.xlane.xlu0 %220 }
 0x18c   : > { %v427_v19 = vpop.eup %426 }
 0x18d   : > { %v208_v23 = vmul.f32 0.6931472, %v427_v19 }
 0x190   : > { %v429_v20 = vpop.eup %428 }
 0x191   : > { %v431_v22 = vpop.eup %430  ;;  %v217_v24 = vmul.f32 0.6931472, %v429_v20 }
 0x192   : > { %v223_v27 = vmul.f32 %v431_v22, %v221_v25 }
 0x193   : > { %v224_v26 = vsub.f32 %v208_v23, %v217_v24 }
 0x195   : > { %v225_v28 = vadd.f32 %v224_v26, %v223_v27 }
 0x197   : > { %v232_v29 = vsel %vm231_vm0, %v225_v28, 0.0 }
 0x198   : > { %v234_v30 = vsel %vm233_vm1, %v232_v29, 0.0 }
 0x199   : > { %235 = vadd.xlane.f32.xlu1 %v234_v30 }
 0x226   : > { %v236_v31 = vpop.xlane.xlu1 %235 }
 0x227   : > { %v237_v32 = vrot.slane %v236_v31, 4 }
 0x229   : > { %v238_v33 = vadd.f32 %v237_v32, %v236_v31 }
 0x22b   : > { %v239_v34 = vrot.slane %v238_v33, 2 }
 0x22d   : > { %v240_v35 = vadd.f32 %v239_v34, %v238_v33 }
 0x22f   : > { %v241_v36 = vrot.slane %v240_v35, 1 }
 0x231   : > { %v242_v37 = vadd.f32 %v241_v36, %v240_v35 }
 0x233   : > { %369 = vpush %v242_v37 }
 0x264   : > { %s370_s4 = spop %369 }
 0x265   : > { %v244_v38 = vstv %s370_s4 }
 0x266   : > { %245 = vst [vmem:[%s195_s7] sm:$0xff] %v244_v38 }
 0x267   : > { %505 = shalt.err (!%p502_p0)
}
 0x268   : > { %s506_s27 = scalar_lea.hbm %s754_s17, 128  ;;  %s510_s8 = scalar_lea.hbm %s797_s2, 384 }
 0x269   : > { %p507_p10 = scmp.ne.s32.totalorder %s754_s17, %s506_s27  ;;  %p511_p3 = scmp.lt.u32.totalorder %s754_s17, %s797_s2 }
 0x26a   : > { %p512_p9 = scmp.lt.u32.totalorder %s510_s8, %s506_s27  ;;  %p514_p12 = scmp.lt.u32.totalorder %s506_s27, %s754_s17 }
 0x26b   : > { %p508_p11 = pnand %p507_p10, %p810_p2 }
 0x26c   : > { %p513_p6 = por %p512_p9, %p511_p3 }
 0x26d   : > { %p509_p1 = pneg %p508_p11 }
 0x26e   : > { %p515_p4 = por %p514_p12, %p513_p6 }
 0x270   : > { %p516_p5 = pnand %p515_p4, %p509_p1 }
 0x272   : > { %519 = shalt.err (!%p516_p5)
}
 0x273   : > { %375 = dma.vmem_to_hbm [thread:$0]  (%p810_p2), %s749_s14, 128, %s754_s17, %s247_s19  }
 0x274 PF: > { %p389_p7 = scmp.ge.s32.totalorder %s562_s12, 2  ;;  %s272_s29 = sand.u32 1, %s550_s9  }
 0x275   : > { %p811_p8 = scmp.ne.s32.totalorder %s803_s22, 0  ;;  %s273_s20 = scalar_lea.sflag [#allocation4], %s272_s29 }
 0x277   : > { %p385_p13 = pnand %p389_p7, %p811_p8 }
 0x279   : > { %545 = dma.done.wait (!%p385_p13), %s273_s20, 128  }
 0x27a   : > { %547 = vsyncadd (!%p385_p13), %s273_s20, 4294967168  ;;  %p18_p0 = scmp.ge.s32.totalorder %s607_s15, 5   ;;  %s812_s9 = smov %s554_s10 }
 0x27b   : > { %s813_s10 = smov %s558_s11  ;;  %s814_s11 = smov %s619_s18 }
 0x27c   : > { %s815_s12 = smov %s607_s15  ;;  %20 = sbr.rel (!%p18_p0) target bundleno = 7 (0x7), region = 86 }
 0x283   :  { %278 = vsyncpa [#allocation3], 1 }
 0x284   :  { %280 = vsyncpa [#allocation3 + $0x1], 1 }
 0x285   :  { %281 = vsyncpa [#allocation6], 1 }
 0x286   :  { %283 = vsyncpa [#allocation6 + $0x1], 1 }
 0x287   :  { %284 = vsyncpa [#allocation4], 1 }
 0x288   :  { %286 = vsyncpa [#allocation4 + $0x1], 1 }

</bundles_post_ra>
